<compile_context>
chip_gen: v5e
topology: v5e:2x2
jax: 0.10.0
libtpu: 0.0.40
codegen_flags: <defaults>
</compile_context>

<pallas_src>
import functools
import math

import jax
import jax.numpy as jnp
from jax.experimental import pallas as pl
from jax.experimental.pallas import tpu as pltpu


_MXU_DTYPE = jnp.bfloat16   # MXU is bf16-native on every TPU generation


def _round_up(x, m):
    return ((x + m - 1) // m) * m


def _chip_info():
    """Returns (act_dtype, tile_budget_bytes, vmem_limit_bytes, multi_core)."""
    try:
        kind = jax.devices()[0].device_kind.lower()
    except Exception:
        kind = ""
    old = any(v in kind for v in ("v2", "v3", "v4", "v5"))
    act_dtype = jnp.float32 if old else jnp.bfloat16   # bf16 VPU/EUP only on v6e+
    if "v7" in kind:                                   # 64 MiB physical VMEM, 2 TCs
        return act_dtype, 36 << 20, 48 << 20, True
    if "v6" in kind or "v5e" in kind or "v5 lite" in kind or "v5lite" in kind:
        return act_dtype, 48 << 20, 80 << 20, False    # 128 MiB physical VMEM
    return act_dtype, 12 << 20, None, False            # stay inside default scoped VMEM


def _choose_batch_tile(B, F, budget_bytes, multi_core, max_tile=None):
    """Rows per grid step: as large as VMEM allows (<=2048), aligned to 256/128/8,
    sized ~cdiv(B, n_steps) to avoid padding blowup, and >=2 steps on v7x."""
    per_row = (5 * F + 1200) * 4                 # streamed tiles + live activations (f32)
    max_tb = int(min(max(budget_bytes // per_row, 8), 2048))
    if max_tile is not None:
        max_tb = int(min(max_tb, max(int(max_tile), 8)))
    min_steps = 2 if (multi_core and B >= 256) else 1    # keep both v7x TCs busy
    n_steps = max(pl.cdiv(B, max_tb), min_steps)
    target = pl.cdiv(B, n_steps)
    mult = 256 if target >= 256 else (128 if target >= 128 else 8)
    tb = _round_up(target, mult)
    if tb > max_tb:
        tb = max((max_tb // mult) * mult, (max_tb // 8) * 8, 8)
    if tb >= B:
        tb = B    # one block covering the whole batch (block dim == array dim is legal)
    return int(tb)


def _autoencoder_kernel(
    x_ref,
    # encoder weights/biases: weights (in, out) bf16, biases (1, out) f32
    we1, be1, we2, be2, we3, be3, we4, be4,
    # decoder weights/biases
    wd1, bd1, wd2, bd2, wd3, bd3, wd4, bd4,
    # outputs
    codes_ref, decoded_ref,
    *, act_dtype,
):
    def layer(h, w_ref, b_ref, tanh):
        # bf16 MXU operands, f32 accumulation; tanh in act_dtype (bf16 on v6e/v7x).
        z = jnp.dot(h.astype(_MXU_DTYPE), w_ref[...],
                    preferred_element_type=jnp.float32) + b_ref[...]
        if tanh:
            return jnp.tanh(z.astype(act_dtype))
        return z   # f32 pre-activation

    x = x_ref[...]

    # ---- encoder ----
    h = layer(x, we1, be1, True)          # (TB, 128)
    h = layer(h, we2, be2, True)          # (TB, 64)
    h = layer(h, we3, be3, True)          # (TB, 16)
    codes = layer(h, we4, be4, False)     # (TB, 8) f32
    codes_ref[...] = codes.astype(codes_ref.dtype)

    # ---- decoder ----
    d = layer(codes, wd1, bd1, True)      # (TB, 16)
    d = layer(d, wd2, bd2, True)          # (TB, 64)
    d = layer(d, wd3, bd3, True)          # (TB, 128)
    z = layer(d, wd4, bd4, False)         # (TB, F) f32
    # sigmoid(z) = 0.5 * tanh(0.5 * z) + 0.5  -> single EUP op, bf16 on v6e/v7x
    t = jnp.tanh((0.5 * z).astype(act_dtype)).astype(jnp.float32)
    decoded_ref[...] = (0.5 * t + 0.5).astype(decoded_ref.dtype)


def init_autoencoder_params(key, feature_length: int, dtype=jnp.float32):
    """PyTorch-like init U(-1/sqrt(fan_in), 1/sqrt(fan_in)).
    Weights stored transposed (in, out); biases (1, out)."""
    enc_dims = [(feature_length, 128), (128, 64), (64, 16), (16, 8)]
    dec_dims = [(8, 16), (16, 64), (64, 128), (128, feature_length)]
    params = []
    for fan_in, fan_out in enc_dims + dec_dims:
        key, kw, kb = jax.random.split(key, 3)
        bound = 1.0 / math.sqrt(fan_in)
        w = jax.random.uniform(kw, (fan_in, fan_out), dtype, -bound, bound)
        b = jax.random.uniform(kb, (1, fan_out), dtype, -bound, bound)
        params.append((w, b))
    return params  # 8 (w, b) pairs: 4 encoder, 4 decoder


def autoencoder_forward(x, params, act_dtype=None, out_dtype=None, max_batch_tile=None):
    """x: (B, F). Returns (codes (B, 8), decoded (B, F)) in out_dtype (default x.dtype)."""
    B, F = x.shape
    chip_act, tile_budget, vmem_limit, multi_core = _chip_info()
    if act_dtype is None:
        act_dtype = chip_act
    if out_dtype is None:
        out_dtype = x.dtype

    weight_args = []
    for w, b in params:
        weight_args.append(w.astype(_MXU_DTYPE))
        weight_args.append(b.astype(jnp.float32))
    weight_bytes = sum(int(a.size) * a.dtype.itemsize for a in weight_args)

    # Weights are (conservatively) double-buffered even with constant index_maps.
    budget = max(tile_budget - 2 * weight_bytes, 2 << 20)
    TB = _choose_batch_tile(B, F, budget, multi_core, max_batch_tile)
    grid = (pl.cdiv(B, TB),)

    # Advisory cost hint for the XLA scheduler.
    dims = [(F, 128), (128, 64), (64, 16), (16, 8),
            (8, 16), (16, 64), (64, 128), (128, F)]
    cost = pl.CostEstimate(
        flops=int(2 * B * sum(a * b for a, b in dims)),
        transcendentals=int(B * (416 + F)),
        bytes_accessed=int(B * F * x.dtype.itemsize
                           + B * (F + 8) * jnp.dtype(out_dtype).itemsize
                           + weight_bytes),
    )

    x_spec = pl.BlockSpec((TB, F), lambda i: (i, 0))
    const_specs = [pl.BlockSpec(a.shape, lambda i: (0, 0)) for a in weight_args]

    codes, decoded = pl.pallas_call(
        functools.partial(_autoencoder_kernel, act_dtype=act_dtype),
        grid=grid,
        in_specs=[x_spec] + const_specs,
        out_specs=(pl.BlockSpec((TB, 8), lambda i: (i, 0)),
                   pl.BlockSpec((TB, F), lambda i: (i, 0))),
        out_shape=(jax.ShapeDtypeStruct((B, 8), out_dtype),
                   jax.ShapeDtypeStruct((B, F), out_dtype)),
        compiler_params=pltpu.CompilerParams(
            dimension_semantics=("parallel",),
            vmem_limit_bytes=vmem_limit),
        cost_estimate=cost,
    )(x, *weight_args)

    return codes, decoded


def autoencoder_reference(x, params, act_dtype=jnp.float32):
    """Pure-JAX reference that mirrors the kernel's precision scheme."""
    def layer(h, w, b, tanh):
        z = jnp.dot(h.astype(_MXU_DTYPE), w.astype(_MXU_DTYPE),
                    preferred_element_type=jnp.float32) + b.astype(jnp.float32)
        return jnp.tanh(z.astype(act_dtype)).astype(jnp.float32) if tanh else z

    h = x
    for i, (w, b) in enumerate(params[:4]):
        h = layer(h, w, b, i < 3)
    codes = h
    d = codes
    for i, (w, b) in enumerate(params[4:]):
        d = layer(d, w, b, i < 3)
    decoded = 0.5 * jnp.tanh((0.5 * d).astype(act_dtype)).astype(jnp.float32) + 0.5
    return codes, decoded


if __name__ == "__main__":
    act_dtype = _chip_info()[0]
    tol = 3e-2 if act_dtype == jnp.bfloat16 else 5e-3

    def check(B, F, key, max_batch_tile=None):
        kx, kp = jax.random.split(key)
        x = jax.random.normal(kx, (B, F), jnp.float32)
        params = init_autoencoder_params(kp, F)
        codes, decoded = autoencoder_forward(x, params, max_batch_tile=max_batch_tile)
        jax.block_until_ready((codes, decoded))
        assert codes.shape == (B, 8) and decoded.shape == (B, F)
        codes_ref, decoded_ref = autoencoder_reference(x, params, act_dtype=act_dtype)
        assert jnp.allclose(codes, codes_ref.astype(codes.dtype), atol=tol, rtol=tol)
        assert jnp.allclose(decoded, decoded_ref.astype(decoded.dtype), atol=tol, rtol=tol)

    key = jax.random.PRNGKey(0)
    k1, k2 = jax.random.split(key)
    # Small shape matching the module spec (single grid step).
    check(8, 32, k1)
    # Multi-step grid with a partial last batch tile and F not a multiple of 128.
    check(260, 48, k2, max_batch_tile=128)

    print("KERNEL_OK")
</pallas_src>

<mosaic_0001>
module attributes {stable_mosaic.version = 11 : i64} {
  func.func @_autoencoder_kernel(%arg0: i32, %arg1: memref<8x32xf32, #tpu.memory_space<vmem>>, %arg2: memref<32x128xbf16, #tpu.memory_space<vmem>>, %arg3: memref<1x128xf32, #tpu.memory_space<vmem>>, %arg4: memref<128x64xbf16, #tpu.memory_space<vmem>>, %arg5: memref<1x64xf32, #tpu.memory_space<vmem>>, %arg6: memref<64x16xbf16, #tpu.memory_space<vmem>>, %arg7: memref<1x16xf32, #tpu.memory_space<vmem>>, %arg8: memref<16x8xbf16, #tpu.memory_space<vmem>>, %arg9: memref<1x8xf32, #tpu.memory_space<vmem>>, %arg10: memref<8x16xbf16, #tpu.memory_space<vmem>>, %arg11: memref<1x16xf32, #tpu.memory_space<vmem>>, %arg12: memref<16x64xbf16, #tpu.memory_space<vmem>>, %arg13: memref<1x64xf32, #tpu.memory_space<vmem>>, %arg14: memref<64x128xbf16, #tpu.memory_space<vmem>>, %arg15: memref<1x128xf32, #tpu.memory_space<vmem>>, %arg16: memref<128x32xbf16, #tpu.memory_space<vmem>>, %arg17: memref<1x32xf32, #tpu.memory_space<vmem>>, %arg18: memref<8x8xf32, #tpu.memory_space<vmem>>, %arg19: memref<8x32xf32, #tpu.memory_space<vmem>>) attributes {dimension_semantics = [#tpu.dimension_semantics<parallel>], iteration_bounds = array<i64: 1>, scalar_prefetch = 0 : i64, scratch_operands = 0 : i64, tpu.core_type = #tpu.core_type<tc>, window_params = [{transform_indices = @transform_0, window_bounds = array<i64: 8, 32>}, {pipeline_mode = #tpu.pipeline_mode<synchronous>, transform_indices = @transform_1, window_bounds = array<i64: 32, 128>}, {pipeline_mode = #tpu.pipeline_mode<synchronous>, transform_indices = @transform_2, window_bounds = array<i64: 1, 128>}, {pipeline_mode = #tpu.pipeline_mode<synchronous>, transform_indices = @transform_3, window_bounds = array<i64: 128, 64>}, {pipeline_mode = #tpu.pipeline_mode<synchronous>, transform_indices = @transform_4, window_bounds = array<i64: 1, 64>}, {pipeline_mode = #tpu.pipeline_mode<synchronous>, transform_indices = @transform_5, window_bounds = array<i64: 64, 16>}, {pipeline_mode = #tpu.pipeline_mode<synchronous>, transform_indices = @transform_6, window_bounds = array<i64: 1, 16>}, {pipeline_mode = #tpu.pipeline_mode<synchronous>, transform_indices = @transform_7, window_bounds = array<i64: 16, 8>}, {pipeline_mode = #tpu.pipeline_mode<synchronous>, transform_indices = @transform_8, window_bounds = array<i64: 1, 8>}, {pipeline_mode = #tpu.pipeline_mode<synchronous>, transform_indices = @transform_9, window_bounds = array<i64: 8, 16>}, {pipeline_mode = #tpu.pipeline_mode<synchronous>, transform_indices = @transform_10, window_bounds = array<i64: 1, 16>}, {pipeline_mode = #tpu.pipeline_mode<synchronous>, transform_indices = @transform_11, window_bounds = array<i64: 16, 64>}, {pipeline_mode = #tpu.pipeline_mode<synchronous>, transform_indices = @transform_12, window_bounds = array<i64: 1, 64>}, {pipeline_mode = #tpu.pipeline_mode<synchronous>, transform_indices = @transform_13, window_bounds = array<i64: 64, 128>}, {pipeline_mode = #tpu.pipeline_mode<synchronous>, transform_indices = @transform_14, window_bounds = array<i64: 1, 128>}, {pipeline_mode = #tpu.pipeline_mode<synchronous>, transform_indices = @transform_15, window_bounds = array<i64: 128, 32>}, {pipeline_mode = #tpu.pipeline_mode<synchronous>, transform_indices = @transform_16, window_bounds = array<i64: 1, 32>}, {transform_indices = @transform_17, window_bounds = array<i64: 8, 8>}, {transform_indices = @transform_18, window_bounds = array<i64: 8, 32>}]} {
    %c0 = arith.constant 0 : index
    %c0_0 = arith.constant 0 : index
    %0 = vector.load %arg1[%c0, %c0_0] : memref<8x32xf32, #tpu.memory_space<vmem>>, vector<8x32xf32>
    %1 = arith.truncf %0 : vector<8x32xf32> to vector<8x32xbf16>
    %c0_1 = arith.constant 0 : index
    %c0_2 = arith.constant 0 : index
    %2 = vector.load %arg2[%c0_1, %c0_2] : memref<32x128xbf16, #tpu.memory_space<vmem>>, vector<32x128xbf16>
    %cst = arith.constant dense<0.000000e+00> : vector<8x128xf32>
    %3 = tpu.matmul %1, %2, %cst {dimension_numbers = #tpu.dot_dimension_numbers<[1], [0], [0], [1], [0, 0, 1, 1], [], []>} : vector<8x32xbf16>, vector<32x128xbf16>, vector<8x128xf32> -> vector<8x128xf32>
    %c0_3 = arith.constant 0 : index
    %c0_4 = arith.constant 0 : index
    %4 = vector.load %arg3[%c0_3, %c0_4] : memref<1x128xf32, #tpu.memory_space<vmem>>, vector<1x128xf32>
    %5 = vector.broadcast %4 : vector<1x128xf32> to vector<8x128xf32>
    %6 = arith.addf %3, %5 : vector<8x128xf32>
    %7 = arith.truncf %6 : vector<8x128xf32> to vector<8x128xbf16>
    %8 = math.tanh %7 : vector<8x128xbf16>
    %c0_5 = arith.constant 0 : index
    %c0_6 = arith.constant 0 : index
    %9 = vector.load %arg4[%c0_5, %c0_6] : memref<128x64xbf16, #tpu.memory_space<vmem>>, vector<128x64xbf16>
    %cst_7 = arith.constant dense<0.000000e+00> : vector<8x64xf32>
    %10 = tpu.matmul %8, %9, %cst_7 {dimension_numbers = #tpu.dot_dimension_numbers<[1], [0], [0], [1], [0, 0, 1, 1], [], []>} : vector<8x128xbf16>, vector<128x64xbf16>, vector<8x64xf32> -> vector<8x64xf32>
    %c0_8 = arith.constant 0 : index
    %c0_9 = arith.constant 0 : index
    %11 = vector.load %arg5[%c0_8, %c0_9] : memref<1x64xf32, #tpu.memory_space<vmem>>, vector<1x64xf32>
    %12 = vector.broadcast %11 : vector<1x64xf32> to vector<8x64xf32>
    %13 = arith.addf %10, %12 : vector<8x64xf32>
    %14 = arith.truncf %13 : vector<8x64xf32> to vector<8x64xbf16>
    %15 = math.tanh %14 : vector<8x64xbf16>
    %c0_10 = arith.constant 0 : index
    %c0_11 = arith.constant 0 : index
    %16 = vector.load %arg6[%c0_10, %c0_11] : memref<64x16xbf16, #tpu.memory_space<vmem>>, vector<64x16xbf16>
    %cst_12 = arith.constant dense<0.000000e+00> : vector<8x16xf32>
    %17 = tpu.matmul %15, %16, %cst_12 {dimension_numbers = #tpu.dot_dimension_numbers<[1], [0], [0], [1], [0, 0, 1, 1], [], []>} : vector<8x64xbf16>, vector<64x16xbf16>, vector<8x16xf32> -> vector<8x16xf32>
    %c0_13 = arith.constant 0 : index
    %c0_14 = arith.constant 0 : index
    %18 = vector.load %arg7[%c0_13, %c0_14] : memref<1x16xf32, #tpu.memory_space<vmem>>, vector<1x16xf32>
    %19 = vector.broadcast %18 : vector<1x16xf32> to vector<8x16xf32>
    %20 = arith.addf %17, %19 : vector<8x16xf32>
    %21 = arith.truncf %20 : vector<8x16xf32> to vector<8x16xbf16>
    %22 = math.tanh %21 : vector<8x16xbf16>
    %c0_15 = arith.constant 0 : index
    %c0_16 = arith.constant 0 : index
    %23 = vector.load %arg8[%c0_15, %c0_16] : memref<16x8xbf16, #tpu.memory_space<vmem>>, vector<16x8xbf16>
    %cst_17 = arith.constant dense<0.000000e+00> : vector<8x8xf32>
    %24 = tpu.matmul %22, %23, %cst_17 {dimension_numbers = #tpu.dot_dimension_numbers<[1], [0], [0], [1], [0, 0, 1, 1], [], []>} : vector<8x16xbf16>, vector<16x8xbf16>, vector<8x8xf32> -> vector<8x8xf32>
    %c0_18 = arith.constant 0 : index
    %c0_19 = arith.constant 0 : index
    %25 = vector.load %arg9[%c0_18, %c0_19] : memref<1x8xf32, #tpu.memory_space<vmem>>, vector<1x8xf32>
    %26 = vector.broadcast %25 : vector<1x8xf32> to vector<8x8xf32>
    %27 = arith.addf %24, %26 : vector<8x8xf32>
    %c0_20 = arith.constant 0 : index
    %c0_21 = arith.constant 0 : index
    %28 = vector.load %arg18[%c0_20, %c0_21] : memref<8x8xf32, #tpu.memory_space<vmem>>, vector<8x8xf32>
    tpu.vector_store %arg18[%c0_20, %c0_21], %27 {strides = array<i32>} : memref<8x8xf32, #tpu.memory_space<vmem>>, vector<8x8xf32>,
    %29 = arith.truncf %27 : vector<8x8xf32> to vector<8x8xbf16>
    %c0_22 = arith.constant 0 : index
    %c0_23 = arith.constant 0 : index
    %30 = vector.load %arg10[%c0_22, %c0_23] : memref<8x16xbf16, #tpu.memory_space<vmem>>, vector<8x16xbf16>
    %cst_24 = arith.constant dense<0.000000e+00> : vector<8x16xf32>
    %31 = tpu.matmul %29, %30, %cst_24 {dimension_numbers = #tpu.dot_dimension_numbers<[1], [0], [0], [1], [0, 0, 1, 1], [], []>} : vector<8x8xbf16>, vector<8x16xbf16>, vector<8x16xf32> -> vector<8x16xf32>
    %c0_25 = arith.constant 0 : index
    %c0_26 = arith.constant 0 : index
    %32 = vector.load %arg11[%c0_25, %c0_26] : memref<1x16xf32, #tpu.memory_space<vmem>>, vector<1x16xf32>
    %33 = vector.broadcast %32 : vector<1x16xf32> to vector<8x16xf32>
    %34 = arith.addf %31, %33 : vector<8x16xf32>
    %35 = arith.truncf %34 : vector<8x16xf32> to vector<8x16xbf16>
    %36 = math.tanh %35 : vector<8x16xbf16>
    %c0_27 = arith.constant 0 : index
    %c0_28 = arith.constant 0 : index
    %37 = vector.load %arg12[%c0_27, %c0_28] : memref<16x64xbf16, #tpu.memory_space<vmem>>, vector<16x64xbf16>
    %cst_29 = arith.constant dense<0.000000e+00> : vector<8x64xf32>
    %38 = tpu.matmul %36, %37, %cst_29 {dimension_numbers = #tpu.dot_dimension_numbers<[1], [0], [0], [1], [0, 0, 1, 1], [], []>} : vector<8x16xbf16>, vector<16x64xbf16>, vector<8x64xf32> -> vector<8x64xf32>
    %c0_30 = arith.constant 0 : index
    %c0_31 = arith.constant 0 : index
    %39 = vector.load %arg13[%c0_30, %c0_31] : memref<1x64xf32, #tpu.memory_space<vmem>>, vector<1x64xf32>
    %40 = vector.broadcast %39 : vector<1x64xf32> to vector<8x64xf32>
    %41 = arith.addf %38, %40 : vector<8x64xf32>
    %42 = arith.truncf %41 : vector<8x64xf32> to vector<8x64xbf16>
    %43 = math.tanh %42 : vector<8x64xbf16>
    %c0_32 = arith.constant 0 : index
    %c0_33 = arith.constant 0 : index
    %44 = vector.load %arg14[%c0_32, %c0_33] : memref<64x128xbf16, #tpu.memory_space<vmem>>, vector<64x128xbf16>
    %cst_34 = arith.constant dense<0.000000e+00> : vector<8x128xf32>
    %45 = tpu.matmul %43, %44, %cst_34 {dimension_numbers = #tpu.dot_dimension_numbers<[1], [0], [0], [1], [0, 0, 1, 1], [], []>} : vector<8x64xbf16>, vector<64x128xbf16>, vector<8x128xf32> -> vector<8x128xf32>
    %c0_35 = arith.constant 0 : index
    %c0_36 = arith.constant 0 : index
    %46 = vector.load %arg15[%c0_35, %c0_36] : memref<1x128xf32, #tpu.memory_space<vmem>>, vector<1x128xf32>
    %47 = vector.broadcast %46 : vector<1x128xf32> to vector<8x128xf32>
    %48 = arith.addf %45, %47 : vector<8x128xf32>
    %49 = arith.truncf %48 : vector<8x128xf32> to vector<8x128xbf16>
    %50 = math.tanh %49 : vector<8x128xbf16>
    %c0_37 = arith.constant 0 : index
    %c0_38 = arith.constant 0 : index
    %51 = vector.load %arg16[%c0_37, %c0_38] : memref<128x32xbf16, #tpu.memory_space<vmem>>, vector<128x32xbf16>
    %cst_39 = arith.constant dense<0.000000e+00> : vector<8x32xf32>
    %52 = tpu.matmul %50, %51, %cst_39 {dimension_numbers = #tpu.dot_dimension_numbers<[1], [0], [0], [1], [0, 0, 1, 1], [], []>} : vector<8x128xbf16>, vector<128x32xbf16>, vector<8x32xf32> -> vector<8x32xf32>
    %c0_40 = arith.constant 0 : index
    %c0_41 = arith.constant 0 : index
    %53 = vector.load %arg17[%c0_40, %c0_41] : memref<1x32xf32, #tpu.memory_space<vmem>>, vector<1x32xf32>
    %54 = vector.broadcast %53 : vector<1x32xf32> to vector<8x32xf32>
    %55 = arith.addf %52, %54 : vector<8x32xf32>
    %cst_42 = arith.constant 5.000000e-01 : f32
    %56 = vector.broadcast %cst_42 : f32 to vector<8x32xf32>
    %57 = arith.mulf %56, %55 : vector<8x32xf32>
    %58 = arith.truncf %57 : vector<8x32xf32> to vector<8x32xbf16>
    %59 = math.tanh %58 : vector<8x32xbf16>
    %60 = arith.extf %59 : vector<8x32xbf16> to vector<8x32xf32>
    %cst_43 = arith.constant 5.000000e-01 : f32
    %61 = vector.broadcast %cst_43 : f32 to vector<8x32xf32>
    %62 = arith.mulf %61, %60 : vector<8x32xf32>
    %cst_44 = arith.constant 5.000000e-01 : f32
    %63 = vector.broadcast %cst_44 : f32 to vector<8x32xf32>
    %64 = arith.addf %62, %63 : vector<8x32xf32>
    %c0_45 = arith.constant 0 : index
    %c0_46 = arith.constant 0 : index
    %65 = vector.load %arg19[%c0_45, %c0_46] : memref<8x32xf32, #tpu.memory_space<vmem>>, vector<8x32xf32>
    tpu.vector_store %arg19[%c0_45, %c0_46], %64 {strides = array<i32>} : memref<8x32xf32, #tpu.memory_space<vmem>>, vector<8x32xf32>,
    return
  }
  func.func @transform_0(%arg0: i32) -> (i32, i32) {
    %c0_i32 = arith.constant 0 : i32
    %c0_i32_0 = arith.constant 0 : i32
    return %arg0, %c0_i32 : i32, i32
  }
  func.func @transform_1(%arg0: i32) -> (i32, i32) {
    %c0_i32 = arith.constant 0 : i32
    %c0_i32_0 = arith.constant 0 : i32
    %c0_i32_1 = arith.constant 0 : i32
    return %c0_i32, %c0_i32_0 : i32, i32
  }
  func.func @transform_2(%arg0: i32) -> (i32, i32) {
    %c0_i32 = arith.constant 0 : i32
    %c0_i32_0 = arith.constant 0 : i32
    %c0_i32_1 = arith.constant 0 : i32
    return %c0_i32, %c0_i32_0 : i32, i32
  }
  func.func @transform_3(%arg0: i32) -> (i32, i32) {
    %c0_i32 = arith.constant 0 : i32
    %c0_i32_0 = arith.constant 0 : i32
    %c0_i32_1 = arith.constant 0 : i32
    return %c0_i32, %c0_i32_0 : i32, i32
  }
  func.func @transform_4(%arg0: i32) -> (i32, i32) {
    %c0_i32 = arith.constant 0 : i32
    %c0_i32_0 = arith.constant 0 : i32
    %c0_i32_1 = arith.constant 0 : i32
    return %c0_i32, %c0_i32_0 : i32, i32
  }
  func.func @transform_5(%arg0: i32) -> (i32, i32) {
    %c0_i32 = arith.constant 0 : i32
    %c0_i32_0 = arith.constant 0 : i32
    %c0_i32_1 = arith.constant 0 : i32
    return %c0_i32, %c0_i32_0 : i32, i32
  }
  func.func @transform_6(%arg0: i32) -> (i32, i32) {
    %c0_i32 = arith.constant 0 : i32
    %c0_i32_0 = arith.constant 0 : i32
    %c0_i32_1 = arith.constant 0 : i32
    return %c0_i32, %c0_i32_0 : i32, i32
  }
  func.func @transform_7(%arg0: i32) -> (i32, i32) {
    %c0_i32 = arith.constant 0 : i32
    %c0_i32_0 = arith.constant 0 : i32
    %c0_i32_1 = arith.constant 0 : i32
    return %c0_i32, %c0_i32_0 : i32, i32
  }
  func.func @transform_8(%arg0: i32) -> (i32, i32) {
    %c0_i32 = arith.constant 0 : i32
    %c0_i32_0 = arith.constant 0 : i32
    %c0_i32_1 = arith.constant 0 : i32
    return %c0_i32, %c0_i32_0 : i32, i32
  }
  func.func @transform_9(%arg0: i32) -> (i32, i32) {
    %c0_i32 = arith.constant 0 : i32
    %c0_i32_0 = arith.constant 0 : i32
    %c0_i32_1 = arith.constant 0 : i32
    return %c0_i32, %c0_i32_0 : i32, i32
  }
  func.func @transform_10(%arg0: i32) -> (i32, i32) {
    %c0_i32 = arith.constant 0 : i32
    %c0_i32_0 = arith.constant 0 : i32
    %c0_i32_1 = arith.constant 0 : i32
    return %c0_i32, %c0_i32_0 : i32, i32
  }
  func.func @transform_11(%arg0: i32) -> (i32, i32) {
    %c0_i32 = arith.constant 0 : i32
    %c0_i32_0 = arith.constant 0 : i32
    %c0_i32_1 = arith.constant 0 : i32
    return %c0_i32, %c0_i32_0 : i32, i32
  }
  func.func @transform_12(%arg0: i32) -> (i32, i32) {
    %c0_i32 = arith.constant 0 : i32
    %c0_i32_0 = arith.constant 0 : i32
    %c0_i32_1 = arith.constant 0 : i32
    return %c0_i32, %c0_i32_0 : i32, i32
  }
  func.func @transform_13(%arg0: i32) -> (i32, i32) {
    %c0_i32 = arith.constant 0 : i32
    %c0_i32_0 = arith.constant 0 : i32
    %c0_i32_1 = arith.constant 0 : i32
    return %c0_i32, %c0_i32_0 : i32, i32
  }
  func.func @transform_14(%arg0: i32) -> (i32, i32) {
    %c0_i32 = arith.constant 0 : i32
    %c0_i32_0 = arith.constant 0 : i32
    %c0_i32_1 = arith.constant 0 : i32
    return %c0_i32, %c0_i32_0 : i32, i32
  }
  func.func @transform_15(%arg0: i32) -> (i32, i32) {
    %c0_i32 = arith.constant 0 : i32
    %c0_i32_0 = arith.constant 0 : i32
    %c0_i32_1 = arith.constant 0 : i32
    return %c0_i32, %c0_i32_0 : i32, i32
  }
  func.func @transform_16(%arg0: i32) -> (i32, i32) {
    %c0_i32 = arith.constant 0 : i32
    %c0_i32_0 = arith.constant 0 : i32
    %c0_i32_1 = arith.constant 0 : i32
    return %c0_i32, %c0_i32_0 : i32, i32
  }
  func.func @transform_17(%arg0: i32) -> (i32, i32) {
    %c0_i32 = arith.constant 0 : i32
    %c0_i32_0 = arith.constant 0 : i32
    return %arg0, %c0_i32 : i32, i32
  }
  func.func @transform_18(%arg0: i32) -> (i32, i32) {
    %c0_i32 = arith.constant 0 : i32
    %c0_i32_0 = arith.constant 0 : i32
    return %arg0, %c0_i32 : i32, i32
  }
}

</mosaic_0001>

<bundles_post_ra>
// kernel: tpu_custom_call.1
= control target key start
LH: loop header
LB: loop body
LE: loop exit
PB: predicated region body
PF: predicated region fallthrough
CT: control target
= control target key end

     0   :  { %s962_s0 = inlined_call_operand.vmem [shape: f32[8,32], index: 0, kind: input, shape index: {}]   ;;  %s963_s1 = inlined_call_operand.vmem [shape: bf16[32,128], index: 1, kind: input, shape index: {}]   ;;  %s964_s2 = inlined_call_operand.vmem [shape: f32[1,128], index: 2, kind: input, shape index: {}]   ;;  %s965_s3 = inlined_call_operand.vmem [shape: bf16[128,64], index: 3, kind: input, shape index: {}]   ;;  %s966_s4 = inlined_call_operand.vmem [shape: f32[1,64], index: 4, kind: input, shape index: {}]   ;;  %s967_s5 = inlined_call_operand.vmem [shape: bf16[64,16], index: 5, kind: input, shape index: {}]   ;;  %s968_s6 = inlined_call_operand.vmem [shape: f32[1,16], index: 6, kind: input, shape index: {}]   ;;  %s969_s7 = inlined_call_operand.vmem [shape: bf16[16,8], index: 7, kind: input, shape index: {}]   ;;  %s970_s8 = inlined_call_operand.vmem [shape: f32[1,8], index: 8, kind: input, shape index: {}]   ;;  %s971_s9 = inlined_call_operand.vmem [shape: bf16[8,16], index: 9, kind: input, shape index: {}]   ;;  %s972_s10 = inlined_call_operand.vmem [shape: f32[1,16], index: 10, kind: input, shape index: {}]   ;;  %s973_s11 = inlined_call_operand.vmem [shape: bf16[16,64], index: 11, kind: input, shape index: {}]   ;;  %s974_s12 = inlined_call_operand.vmem [shape: f32[1,64], index: 12, kind: input, shape index: {}]   ;;  %s975_s13 = inlined_call_operand.vmem [shape: bf16[64,128], index: 13, kind: input, shape index: {}]   ;;  %s976_s14 = inlined_call_operand.vmem [shape: f32[1,128], index: 14, kind: input, shape index: {}]   ;;  %s977_s15 = inlined_call_operand.vmem [shape: bf16[128,32], index: 15, kind: input, shape index: {}]   ;;  %s978_s16 = inlined_call_operand.vmem [shape: f32[1,32], index: 16, kind: input, shape index: {}]   ;;  %s979_s17 = inlined_call_operand.hbm [shape: f32[8,8], index: 17, kind: output, shape index: {0}]   ;;  %s980_s18 = inlined_call_operand.hbm [shape: f32[8,32], index: 18, kind: output, shape index: {1}]  }
   0x1   :  { %982 = sst [smem:[#allocation8_spill]] %s962_s0 }
   0x2   :  { %983 = sst [smem:[#allocation9_spill]] %s963_s1 }
   0x3   :  { %984 = sst [smem:[#allocation10_spill]] %s964_s2 }
   0x4   :  { %24 = vsyncpa [#allocation3], 0  ;;  %s985_s29 = sld [smem:[#allocation9_spill]]  ;;  %v644_v2 = vld [vmem:[%s965_s3 + $0x38] sm:$0xff]  ;;  %v643_v4 = vld [vmem:[%s965_s3 + $0x30] sm:$0xff] }
   0x5   :  { %s986_s22 = sld [smem:[#allocation8_spill]]  ;;  %172 = vmatpush.bf16.msra.mxu1 %v644_v2 }
   0xa   :  { %v636_v0 = vld [vmem:[%s985_s29 + $0x8] sm:$0xff]  ;;  %v635_v1 = vld [vmem:[%s985_s29] sm:$0xff] }
   0xb   :  { %93 = vmatpush.bf16.msra.mxu0 %v636_v0  ;;  %v61_v3 = vld [vmem:[%s986_s22] sm:$0xff] }
   0xc   :  { %v62_v5 = vpack.c.bf16 %v61_v3, %v61_v3 }
   0xd   :  { %25 = vsyncpa [#allocation5], 0  ;;  %vm83_vm0 = vcmask 261120   ;;  %173 = vmatpush.bf16.msra.mxu1 %v643_v4  ;;  %v642_v6 = vld [vmem:[%s965_s3 + $0x28] sm:$0xff]  ;;  %v641_v7 = vld [vmem:[%s965_s3 + $0x20] sm:$0xff]  ;;  %s987_s23 = sld [smem:[#allocation10_spill]] }
   0xe   :  { %v640_v8 = vld [vmem:[%s965_s3 + $0x18] sm:$0xff]  ;;  %v639_v9 = vld [vmem:[%s965_s3 + $0x10] sm:$0xff]  ;;  %v638_v10 = vld [vmem:[%s965_s3 + $0x8] sm:$0xff]  ;;  %vm225_vm1 = vcmask 523264   ;;  %vm258_vm2 = vcmask 130048   ;;  %vm286_vm3 = vcmask 1043456  }
   0xf   :  { %94 = vmatpush.bf16.msra.mxu0 %v635_v1  ;;  %v637_v11 = vld [vmem:[%s965_s3] sm:$0xff]  ;;  %v648_v20 = vld [vmem:[%s967_s5 + $0x18] sm:$0xff]  ;;  %v647_v21 = vld [vmem:[%s967_s5 + $0x10] sm:$0xff]  ;;  %vm275_vm4 = vcmask 64512   ;;  %s739_s26 = smov [#allocation2]   ;;  %s503_s0 = sshll.u32 %s980_s18, 4  ;;  %s504_s0 = int_to_ptr.hbm [resolvable:$true] %s503_s0 }
  0x10   :  { %233 = vmatpush.bf16.msra.mxu2 %v648_v20  ;;  %v646_v22 = vld [vmem:[%s967_s5 + $0x8] sm:$0xff]  ;;  %v645_v23 = vld [vmem:[%s967_s5] sm:$0xff]  ;;  %v654_v57 = vld [vmem:[%s975_s13 + $0x18] sm:$0xff] }
  0x11   :  { %174 = vmatpush.bf16.msra.mxu1 %v642_v6  ;;  %v666_v24 = vld [vmem:[%s966_s4] ss:$0 sm:$0xff]  ;;  %v653_v58 = vld [vmem:[%s975_s13 + $0x10] sm:$0xff]  ;;  %v652_v59 = vld [vmem:[%s975_s13 + $0x8] sm:$0xff] }
  0x12   :  { %525 = vmatmul.msk.bf16.vlgmr.msra.gmra.mxu0 %vm83_vm0, %v62_v5  ;;  %v649_v32 = vld [vmem:[%s969_s7] sm:$0xff]  ;;  %v662_v61 = vld [vmem:[%s977_s15 + $0x38] sm:$0xff]  ;;  %v661_v62 = vld [vmem:[%s977_s15 + $0x30] sm:$0xff] }
  0x13   :  { %v665_v12 = vld [vmem:[%s987_s23] ss:$0 sm:$0xff]  ;;  %269 = vmatpush.bf16.msrb.mxu0 %v649_v32  ;;  %v660_v63 = vld [vmem:[%s977_s15 + $0x28] sm:$0xff] }
  0x14   :  { %234 = vmatpush.bf16.msra.mxu2 %v647_v21  ;;  %v667_v33 = vld [vmem:[%s968_s6] ss:$0 sm:$0xff] }
  0x15   :  { %175 = vmatpush.bf16.msra.mxu1 %v641_v7  ;;  %v278_v41 = vld [vmem:[%s971_s9] sm:$0xf] }
  0x16   :  { %v288_v42 = vsel %vm286_vm3, %v278_v41, 0  ;;  %v668_v43 = vld [vmem:[%s970_s8] ss:$0 sm:$0xff] }
  0x17   :  { %297 = vmatpush.bf16.msra.mxu3 %v288_v42  ;;  %v650_v48 = vld [vmem:[%s973_s11] sm:$0xff] }
  0x18   :  { %235 = vmatpush.bf16.msra.mxu2 %v646_v22  ;;  %329 = vmatpush.bf16.msra.mxu0 %v650_v48  ;;  %v669_v49 = vld [vmem:[%s972_s10] ss:$0 sm:$0xff]  ;;  %s492_s10 = sshll.u32 %s979_s17, 4  ;;  %s740_s17 = smov [#allocation4]   ;;  %s493_s10 = int_to_ptr.hbm [resolvable:$true] %s492_s10 }
  0x19   :  { %176 = vmatpush.bf16.msra.mxu1 %v640_v8  ;;  %v651_v60 = vld [vmem:[%s975_s13] sm:$0xff]  ;;  %s501_s28 = sshll.u32 %s740_s17, 4  ;;  %s502_s28 = int_to_ptr.vmem [resolvable:$true] %s501_s28 }
  0x1a   :  { %v659_v0 = vld [vmem:[%s977_s15 + $0x20] sm:$0xff] }
  0x1b   :  { %463 = vmatpush.bf16.msrb.mxu3 %v662_v61  ;;  %v670_v1 = vld [vmem:[%s974_s12] ss:$0 sm:$0xff] }
  0x1c   :  { %236 = vmatpush.bf16.msra.mxu2 %v645_v23  ;;  %v672_v21 = vld [vmem:[%s978_s16] ss:$0 sm:$0xff] }
  0x1d   :  { %177 = vmatpush.bf16.msra.mxu1 %v639_v9  ;;  %v658_v9 = vld [vmem:[%s977_s15 + $0x18] sm:$0xff] }
  0x1f   :  { %464 = vmatpush.bf16.msrb.mxu3 %v661_v62 }
  0x20   :  { %382 = vmatpush.bf16.msrb.mxu2 %v654_v57 }
  0x21   :  { %178 = vmatpush.bf16.msra.mxu1 %v638_v10  ;;  %v657_v10 = vld [vmem:[%s977_s15 + $0x10] sm:$0xff] }
  0x23   :  { %465 = vmatpush.bf16.msrb.mxu3 %v660_v63 }
  0x24   :  { %383 = vmatpush.bf16.msrb.mxu2 %v653_v58 }
  0x25   :  { %179 = vmatpush.bf16.msra.mxu1 %v637_v11  ;;  %v656_v11 = vld [vmem:[%s977_s15 + $0x8] sm:$0xff] }
  0x27   :  { %466 = vmatpush.bf16.msrb.mxu3 %v659_v0 }
  0x28   :  { %384 = vmatpush.bf16.msrb.mxu2 %v652_v59 }
  0x2b   :  { %467 = vmatpush.bf16.msrb.mxu3 %v658_v9 }
  0x2c   :  { %385 = vmatpush.bf16.msrb.mxu2 %v651_v60 }
  0x2f   :  { %468 = vmatpush.bf16.msrb.mxu3 %v657_v10 }
  0x33   :  { %469 = vmatpush.bf16.msrb.mxu3 %v656_v11 }
  0x8f   :  { %v96_v13 = vpop.f32.mrf.mxu0 }
  0x90   :  { %v97_v14 = vadd.f32 %v665_v12, %v96_v13  ;;  %v655_v12 = vld [vmem:[%s977_s15] sm:$0xff]  ;;  %s490_s15 = sshll.u32 %s739_s26, 4  ;;  %s491_s15 = int_to_ptr.vmem [resolvable:$true] %s490_s15 }
  0x91   :  { %470 = vmatpush.bf16.msrb.mxu3 %v655_v12  ;;  %v671_v13 = vld [vmem:[%s976_s14] ss:$0 sm:$0xff] }
  0x92   :  { %v100_v15 = vpack.c.bf16 %v97_v14, %v97_v14 }
  0x94   :  { %v101_v16 = vunpack.c.l.bf16 %v100_v15 }
  0x96   :  { %673 = vtanh.f32 %v101_v16 }
  0x97   :  { %v98_v17 = vpop.f32.mrf.mxu0 }
  0x9c   :  { %v674_v18 = vpop.eup %673 }
  0x9d   :  { %v103_v19 = vpack.c.bf16 %v674_v18, %v674_v18 }
  0x9f   :  { %180 = vmatmul.bf16.vlgmr.msra.gmra.mxu1 %v103_v19 }
 0x11c   :  { %v181_v25 = vpop.f32.mrf.mxu1 }
 0x11d   :  { %v182_v26 = vadd.f32 %v666_v24, %v181_v25 }
 0x11f   :  { %v185_v27 = vpack.c.bf16 %v182_v26, %v182_v26 }
 0x121   :  { %v186_v28 = vunpack.c.l.bf16 %v185_v27 }
 0x123   :  { %675 = vtanh.f32 %v186_v28 }
 0x124   :  { %v183_v29 = vpop.f32.mrf.mxu1 }
 0x129   :  { %v676_v30 = vpop.eup %675 }
 0x12a   :  { %v188_v31 = vpack.c.bf16 %v676_v30, %v676_v30 }
 0x12c   :  { %574 = vmatmul.msk.bf16.vlgmr.msra.gmra.mxu2 %vm225_vm1, %v188_v31 }
 0x1af   :  { %v238_v34 = vpop.f32.mrf.mxu2 }
 0x1b0   :  { %v239_v35 = vadd.f32 %v667_v33, %v238_v34 }
 0x1b2   :  { %v242_v36 = vpack.c.bf16 %v239_v35, %v239_v35 }
 0x1b4   :  { %v243_v37 = vunpack.c.l.bf16 %v242_v36 }
 0x1b6   :  { %677 = vtanh.f32 %v243_v37 }
 0x1b7   :  { %v240_v38 = vpop.f32.mrf.mxu2 }
 0x1bc   :  { %v678_v39 = vpop.eup %677 }
 0x1bd   :  { %v245_v40 = vpack.c.bf16 %v678_v39, %v678_v39 }
 0x1bf   :  { %579 = vmatmul.msk.bf16.vlgmr.msrb.gmra.mxu0 %vm258_vm2, %v245_v40 }
 0x23c   :  { %v271_v44 = vpop.f32.mrf.mxu0 }
 0x23d   :  { %v272_v45 = vadd.f32 %v668_v43, %v271_v44 }
 0x23f   :  { %v277_v46 = vpack.c.bf16 %v272_v45, %v272_v45  ;;  %276 = vst.msk [vmem:[#allocation2] sm:$0xff] %vm275_vm4, %v272_v45 }
 0x240   :  { %495 = dma.vmem_to_hbm [thread:$0]  %s491_s15, 128, %s493_s10, [#allocation3]  }
 0x241   :  { %580 = vmatmul.msk.bf16.vlgmr.msra.gmra.mxu3 %vm275_vm4, %v277_v46 }
 0x244   :  { %v273_v47 = vpop.f32.mrf.mxu0 }
 0x2c4   :  { %v299_v50 = vpop.f32.mrf.mxu3 }
 0x2c5   :  { %v300_v51 = vadd.f32 %v669_v49, %v299_v50 }
 0x2c7   :  { %v303_v52 = vpack.c.bf16 %v300_v51, %v300_v51 }
 0x2c9   :  { %v304_v53 = vunpack.c.l.bf16 %v303_v52 }
 0x2cb   :  { %679 = vtanh.f32 %v304_v53 }
 0x2cc   :  { %v301_v54 = vpop.f32.mrf.mxu3 }
 0x2d1   :  { %v680_v55 = vpop.eup %679 }
 0x2d2   :  { %v306_v56 = vpack.c.bf16 %v680_v55, %v680_v55 }
 0x2d4   :  { %585 = vmatmul.msk.bf16.vlgmr.msra.gmra.mxu0 %vm258_vm2, %v306_v56 }
 0x351   :  { %v331_v2 = vpop.f32.mrf.mxu0 }
 0x352   :  { %v332_v3 = vadd.f32 %v670_v1, %v331_v2 }
 0x354   :  { %v335_v4 = vpack.c.bf16 %v332_v3, %v332_v3 }
 0x356   :  { %v336_v5 = vunpack.c.l.bf16 %v335_v4 }
 0x358   :  { %681 = vtanh.f32 %v336_v5 }
 0x359   :  { %v333_v6 = vpop.f32.mrf.mxu0 }
 0x35e   :  { %v682_v7 = vpop.eup %681 }
 0x35f   :  { %v338_v8 = vpack.c.bf16 %v682_v7, %v682_v7 }
 0x361   :  { %602 = vmatmul.msk.bf16.vlgmr.msrb.gmra.mxu2 %vm225_vm1, %v338_v8 }
 0x3e4   :  { %v387_v14 = vpop.f32.mrf.mxu2 }
 0x3e5   :  { %v388_v15 = vadd.f32 %v671_v13, %v387_v14 }
 0x3e7   :  { %v391_v16 = vpack.c.bf16 %v388_v15, %v388_v15 }
 0x3e9   :  { %v392_v17 = vunpack.c.l.bf16 %v391_v16 }
 0x3eb   :  { %683 = vtanh.f32 %v392_v17 }
 0x3ec   :  { %v389_v18 = vpop.f32.mrf.mxu2 }
 0x3f1   :  { %v684_v19 = vpop.eup %683 }
 0x3f2   :  { %v394_v20 = vpack.c.bf16 %v684_v19, %v684_v19 }
 0x3f4   :  { %471 = vmatmul.bf16.vlgmr.msrb.gmra.mxu3 %v394_v20 }
 0x477   :  { %v472_v22 = vpop.f32.mrf.mxu3 }
 0x478   :  { %v473_v23 = vadd.f32 %v672_v21, %v472_v22 }
 0x47a   :  { %v476_v24 = vmul.f32 0.5, %v473_v23 }
 0x47c   :  { %v477_v25 = vpack.c.bf16 %v476_v24, %v476_v24 }
 0x47e   :  { %v478_v26 = vunpack.c.l.bf16 %v477_v25 }
 0x47f   :  { %v474_v27 = vpop.f32.mrf.mxu3 }
 0x480   :  { %685 = vtanh.f32 %v478_v26 }
 0x486   :  { %v686_v28 = vpop.eup %685 }
 0x487   :  { %v480_v29 = vpack.c.bf16 %v686_v28, %v686_v28 }
 0x489   :  { %v481_v30 = vunpack.c.l.bf16 %v480_v29 }
 0x48b   :  { %v482_v31 = vmul.f32 0.5, %v481_v30 }
 0x48d   :  { %v483_v32 = vadd.f32 0.5, %v482_v31 }
 0x48f   :  { %484 = vst.msk [vmem:[#allocation4] sm:$0xff] %vm83_vm0, %v483_v32 }
 0x490   :  { %506 = dma.vmem_to_hbm [thread:$0]  %s502_s28, 128, %s504_s0, [#allocation5]  }
 0x491   :  { %735 = dma.done.wait [#allocation3], 128  }
 0x492   :  { %736 = vsyncadd [#allocation3], 4294967168 }
 0x493   :  { %737 = dma.done.wait [#allocation5], 128  }
 0x494   :  { %738 = vsyncadd [#allocation5], 4294967168 }
 0x495   :  { %515 = vsyncpa [#allocation3], 1 }
 0x496   :  { %516 = vsyncpa [#allocation5], 1 }

</bundles_post_ra>
